<compile_context>
chip_gen: v5e
topology: v5e:2x2
jax: 0.10.0
libtpu: 0.0.40
codegen_flags: <defaults>
</compile_context>

<pallas_src>
import functools

import jax
import jax.numpy as jnp
from jax.experimental import pallas as pl
from jax.experimental.pallas import tpu as pltpu

EPS = 1e-5


# ----------------------------- Pallas kernel ------------------------------- #

def _conv_kernel(*refs, nb, h, apply_act):
    """3x3 conv (stride 1, padding 1) on NB stacked samples in row-flat layout.

    Optionally fuses the previous layer's (BN + conditional) affine + ReLU into the
    input path, and emits [sum, sumsq] over rows as a BatchNorm epilogue.
    """
    if apply_act:
        x_ref, w_ref, bias_ref, scale_ref, shift_ref, o_ref, stats_ref = refs
    else:
        x_ref, w_ref, bias_ref, o_ref, stats_ref = refs
        scale_ref = shift_ref = None

    x = x_ref[...]                                          # (nb, h, W*Cin) f32
    if apply_act:
        # Fused previous-layer SandwichBN affine + ReLU (per-sample scale/shift).
        x = jnp.maximum(x * scale_ref[...] + shift_ref[...], 0.0)

    m = nb * h
    x = x.reshape(m, x.shape[-1])                           # (m, W*Cin): leading-dim merge

    # Row index within each sample; after the +/-1-row shift, zero the rows that
    # would otherwise read across a sample (or block) boundary.  This replaces the
    # zero halo rows of an explicit padded scratch.
    row = jax.lax.broadcasted_iota(jnp.int32, (m, 1), 0) % h
    x_prev = jnp.where(row == 0, 0.0, jnp.roll(x, 1, axis=0))       # x[h-1]
    x_next = jnp.where(row == h - 1, 0.0, jnp.roll(x, -1, axis=0))  # x[h+1]

    # bf16 MXU operands, f32 accumulation.  Contraction packs (kx, Cin); the zero
    # padding along W is encoded in the banded weights.
    xb = x.astype(jnp.bfloat16)
    xp = x_prev.astype(jnp.bfloat16)
    xn = x_next.astype(jnp.bfloat16)
    acc = jnp.dot(xp, w_ref[0], preferred_element_type=jnp.float32)
    acc = acc + jnp.dot(xb, w_ref[1], preferred_element_type=jnp.float32)
    acc = acc + jnp.dot(xn, w_ref[2], preferred_element_type=jnp.float32)
    out = acc + bias_ref[...]                               # (m, W*Cout) f32

    o_ref[...] = out.reshape(nb, h, out.shape[-1])
    # BatchNorm partial statistics: one stacked (2, W*Cout) store.
    stats_ref[...] = jnp.concatenate(
        [jnp.sum(out, axis=0, keepdims=True),
         jnp.sum(out * out, axis=0, keepdims=True)], axis=0)


# ------------------------------ JAX wrappers -------------------------------- #

def _compiler_params(block_bytes):
    # VMEM budget from the actual block bytes (pipeline double-buffers the blocks)
    # plus fixed headroom for Mosaic-internal scratch; valid on v5e/v6e/v7x.
    limit = int(min(2 * block_bytes + (4 << 20), 48 << 20))
    return pltpu.CompilerParams(dimension_semantics=("parallel",),
                                vmem_limit_bytes=limit)


def _banded_weights(w_oihw, W):
    """Pack the 3x3 taps into 3 banded (W*Cin, W*Cout) bf16 matrices, one per ky.

    B[ky][(w+kx-1)*Cin + ci, w*Cout + co] = w[co, ci, ky, kx]; entries with w+kx-1
    outside [0, W) are dropped, which implements the zero padding along W.
    """
    wt = jnp.transpose(w_oihw, (2, 3, 1, 0)).astype(jnp.float32)   # (3,3,Cin,Cout)
    Cin, Cout = wt.shape[2], wt.shape[3]
    bands = []
    for ky in range(3):
        bk = jnp.zeros((W * Cin, W * Cout), jnp.float32)
        for kx in range(3):
            eye = jnp.eye(W, W, k=-(kx - 1), dtype=jnp.float32)
            bk = bk + jnp.kron(eye, wt[ky, kx])
        bands.append(bk)
    return jnp.stack(bands, axis=0).astype(jnp.bfloat16)           # (3, W*Cin, W*Cout)


def conv3x3_rowflat(x_rows, w_oihw, b, *, W, act_scale=None, act_shift=None):
    """3x3 conv, stride 1, padding 1, on row-flat input (N, H, W*Cin).

    Returns (out (N, H, W*Cout) f32, stats (G, 2, W*Cout) f32); stats holds per-block
    [sum, sumsq] over rows, used by the following BatchNorm.
    """
    N, H, WCin = x_rows.shape
    Cout, Cin = w_oihw.shape[0], w_oihw.shape[1]
    assert WCin == W * Cin
    assert H % 8 == 0, "row-flat reshape assumes H is a multiple of the sublane tile"
    WCout = W * Cout

    # Samples per grid step: fill the MXU M dimension (~256 rows); NB must divide N.
    NB = min(N, max(1, 256 // H))
    while N % NB:
        NB -= 1
    G = N // NB

    banded = _banded_weights(w_oihw, W)                       # (3, W*Cin, W*Cout) bf16
    bias_row = jnp.tile(b.astype(jnp.float32), W).reshape(1, WCout)

    apply_act = act_scale is not None
    kernel = functools.partial(_conv_kernel, nb=NB, h=H, apply_act=apply_act)

    in_specs = [
        pl.BlockSpec((NB, H, WCin), lambda i: (i, 0, 0)),
        pl.BlockSpec((3, WCin, WCout), lambda i: (0, 0, 0)),
        pl.BlockSpec((1, WCout), lambda i: (0, 0)),
    ]
    args = [x_rows, banded, bias_row]
    if apply_act:
        in_specs += [
            pl.BlockSpec((NB, 1, WCin), lambda i: (i, 0, 0)),
            pl.BlockSpec((NB, 1, WCin), lambda i: (i, 0, 0)),
        ]
        args += [act_scale, act_shift]

    block_bytes = (4 * (NB * H * WCin + WCout + 2 * NB * WCin
                        + NB * H * WCout + 2 * WCout)
                   + 2 * 3 * WCin * WCout)                    # weights are bf16

    out, stats = pl.pallas_call(
        kernel,
        grid=(G,),
        in_specs=in_specs,
        out_specs=(
            pl.BlockSpec((NB, H, WCout), lambda i: (i, 0, 0)),
            pl.BlockSpec((None, 2, WCout), lambda i: (i, 0, 0)),
        ),
        out_shape=(
            jax.ShapeDtypeStruct((N, H, WCout), jnp.float32),
            jax.ShapeDtypeStruct((G, 2, WCout), jnp.float32),
        ),
        compiler_params=_compiler_params(block_bytes),
    )(*args)
    return out, stats


def fold_bn_affine(stats, bn_w, bn_b, embed_w, y, *, count, W, C):
    """Reduce the conv stats to batch mean/var and fold the BatchNorm affine with the
    conditional (embedding) gamma/beta into one per-(sample, channel) scale/shift,
    tiled into the row-flat lane layout.  (Tiny XLA glue on (2, C)-sized data.)"""
    s = stats.sum(axis=0).reshape(2, W, C).sum(axis=1)        # (2, C)
    mean = s[0] / count
    var = s[1] / count - mean * mean                          # biased (training-mode)
    invstd = jax.lax.rsqrt(var + EPS)

    gb = embed_w[y]                                           # (N, 2C) embedding lookup (glue)
    gamma, beta = gb[:, :C], gb[:, C:]
    scale = gamma * (bn_w * invstd)[None, :]                              # (N, C)
    shift = gamma * (bn_b - mean * bn_w * invstd)[None, :] + beta         # (N, C)

    N = gb.shape[0]
    scale_row = jnp.tile(scale, (1, W)).reshape(N, 1, W * C)
    shift_row = jnp.tile(shift, (1, W)).reshape(N, 1, W * C)
    return scale_row, shift_row


def double_convolution_forward(x_nchw, y, p):
    N, Cin, H, W = x_nchw.shape
    Cout = p["w1"].shape[0]

    # NCHW -> NHWC -> row-flat (N, H, W*Cin): one input-layout pass (XLA glue).
    x = jnp.transpose(x_nchw, (0, 2, 3, 1)).reshape(N, H, W * Cin)

    # conv1 (+ BN1 batch-statistics epilogue).
    h1, st1 = conv3x3_rowflat(x, p["w1"], p["b1"], W=W)
    sc1, sh1 = fold_bn_affine(st1, p["bn1_w"], p["bn1_b"], p["embed1"], y,
                              count=N * H * W, W=W, C=Cout)

    # conv2 with BN1 affine + ReLU fused into its input path (+ BN2 statistics).
    h2, st2 = conv3x3_rowflat(h1, p["w2"], p["b2"], W=W,
                              act_scale=sc1, act_shift=sh1)
    sc2, sh2 = fold_bn_affine(st2, p["bn2_w"], p["bn2_b"], p["embed2"], y,
                              count=N * H * W, W=W, C=Cout)

    # Final SandwichBN affine + ReLU, folded into the single NHWC->NCHW layout pass
    # (XLA fuses them: one read of h2, one write of the output -- no extra round trip).
    # TODO(synk): emitting (N, Cout, H*W) directly from a Pallas epilogue would need a
    # 3-axis sublane/lane relayout in-kernel; left to this fused XLA pass instead.
    out = jnp.maximum(h2 * sc2 + sh2, 0.0).reshape(N, H, W, Cout)
    return jnp.transpose(out, (0, 3, 1, 2))                   # NHWC -> NCHW


# ------------------------- pure-JAX reference (check) ----------------------- #

def _ref_forward(x, y, p):
    def conv(x, w, b):
        out = jax.lax.conv_general_dilated(
            x, w, (1, 1), ((1, 1), (1, 1)),
            dimension_numbers=("NCHW", "OIHW", "NCHW"))
        return out + b[None, :, None, None]

    def sbn_relu(x, bnw, bnb, emb, y):
        C = bnw.shape[0]
        mean = jnp.mean(x, axis=(0, 2, 3), keepdims=True)
        var = jnp.mean((x - mean) ** 2, axis=(0, 2, 3), keepdims=True)
        xn = (x - mean) / jnp.sqrt(var + EPS)
        xn = xn * bnw[None, :, None, None] + bnb[None, :, None, None]
        gb = emb[y]
        g = gb[:, :C][:, :, None, None]
        b = gb[:, C:][:, :, None, None]
        return jnp.maximum(g * xn + b, 0.0)

    x = conv(x, p["w1"], p["b1"])
    x = sbn_relu(x, p["bn1_w"], p["bn1_b"], p["embed1"], y)
    x = conv(x, p["w2"], p["b2"])
    x = sbn_relu(x, p["bn2_w"], p["bn2_b"], p["embed2"], y)
    return x


# ----------------------------------- main ----------------------------------- #

if __name__ == "__main__":
    N, Cin, Cout, H, W, num_classes = 2, 4, 8, 16, 16, 5

    key = jax.random.PRNGKey(0)
    ks = jax.random.split(key, 8)

    params = {
        # conv weights (PyTorch OIHW convention), deterministic synthetic init
        "w1": 0.1 * jax.random.normal(ks[0], (Cout, Cin, 3, 3), jnp.float32),
        "b1": 0.1 * jax.random.normal(ks[1], (Cout,), jnp.float32),
        "w2": 0.1 * jax.random.normal(ks[2], (Cout, Cout, 3, 3), jnp.float32),
        "b2": 0.1 * jax.random.normal(ks[3], (Cout,), jnp.float32),
        # BatchNorm affine params (PyTorch default init: weight=1, bias=0)
        "bn1_w": jnp.ones((Cout,), jnp.float32),
        "bn1_b": jnp.zeros((Cout,), jnp.float32),
        "bn2_w": jnp.ones((Cout,), jnp.float32),
        "bn2_b": jnp.zeros((Cout,), jnp.float32),
        # embedding: first half ~ N(1, 0.02), second half zeros (as in __init__)
        "embed1": jnp.concatenate(
            [1.0 + 0.02 * jax.random.normal(ks[4], (num_classes, Cout), jnp.float32),
             jnp.zeros((num_classes, Cout), jnp.float32)], axis=1),
        "embed2": jnp.concatenate(
            [1.0 + 0.02 * jax.random.normal(ks[5], (num_classes, Cout), jnp.float32),
             jnp.zeros((num_classes, Cout), jnp.float32)], axis=1),
    }

    x = jax.random.normal(ks[6], (N, Cin, H, W), jnp.float32)   # NCHW, like PyTorch
    y = jnp.array([1, 3], dtype=jnp.int32)                      # class labels

    out = jax.block_until_ready(double_convolution_forward(x, y, params))
    ref = jax.block_until_ready(_ref_forward(x, y, params))

    assert out.shape == (N, Cout, H, W), out.shape
    # Tolerance reflects bf16 MXU operands (f32 accumulation) through two chained
    # convs + two BatchNorm normalizations; the f32 reference is exact.
    assert jnp.allclose(out, ref, atol=5e-2, rtol=5e-2), float(jnp.max(jnp.abs(out - ref)))

    print("KERNEL_OK")
</pallas_src>

<mosaic_0001>
module attributes {stable_mosaic.version = 11 : i64} {
  func.func @_conv_kernel(%arg0: i32, %arg1: memref<2x16x64xf32, #tpu.memory_space<vmem>>, %arg2: memref<3x64x128xbf16, #tpu.memory_space<vmem>>, %arg3: memref<1x128xf32, #tpu.memory_space<vmem>>, %arg4: memref<2x16x128xf32, #tpu.memory_space<vmem>>, %arg5: memref<1x2x128xf32, #tpu.memory_space<vmem>>) attributes {dimension_semantics = [#tpu.dimension_semantics<parallel>], iteration_bounds = array<i64: 1>, scalar_prefetch = 0 : i64, scratch_operands = 0 : i64, tpu.core_type = #tpu.core_type<tc>, window_params = [{transform_indices = @transform_0, window_bounds = array<i64: 2, 16, 64>}, {pipeline_mode = #tpu.pipeline_mode<synchronous>, transform_indices = @transform_1, window_bounds = array<i64: 3, 64, 128>}, {pipeline_mode = #tpu.pipeline_mode<synchronous>, transform_indices = @transform_2, window_bounds = array<i64: 1, 128>}, {transform_indices = @transform_3, window_bounds = array<i64: 2, 16, 128>}, {transform_indices = @transform_4, window_bounds = array<i64: 1, 2, 128>}]} {
    %c0 = arith.constant 0 : index
    %c0_0 = arith.constant 0 : index
    %c0_1 = arith.constant 0 : index
    %0 = vector.load %arg1[%c0, %c0_0, %c0_1] : memref<2x16x64xf32, #tpu.memory_space<vmem>>, vector<2x16x64xf32>
    %1 = vector.shape_cast %0 : vector<2x16x64xf32> to vector<32x64xf32>
    %2 = tpu.iota {dimensions = array<i32: 0>} : vector<32x1xi32>
    %c16_i32 = arith.constant 16 : i32
    %c0_i32 = arith.constant 0 : i32
    %3 = arith.cmpi eq, %c16_i32, %c0_i32 : i32
    %c1_i32 = arith.constant 1 : i32
    %4 = arith.select %3, %c1_i32, %c16_i32 : i32
    %5 = vector.broadcast %4 : i32 to vector<32x1xi32>
    %6 = arith.remsi %2, %5 : vector<32x1xi32>
    %c0_i32_2 = arith.constant 0 : i32
    %7 = vector.broadcast %c0_i32_2 : i32 to vector<32x1xi32>
    %8 = arith.cmpi ne, %6, %7 : vector<32x1xi32>
    %c0_i32_3 = arith.constant 0 : i32
    %9 = vector.broadcast %c0_i32_3 : i32 to vector<32x1xi32>
    %10 = arith.cmpi slt, %6, %9 : vector<32x1xi32>
    %c0_i32_4 = arith.constant 0 : i32
    %11 = arith.cmpi slt, %4, %c0_i32_4 : i32
    %12 = vector.broadcast %11 : i1 to vector<32x1xi1>
    %13 = vector.broadcast %12 : vector<32x1xi1> to vector<32x1xi1>
    %14 = arith.xori %10, %13 : vector<32x1xi1>
    %15 = arith.andi %14, %8 : vector<32x1xi1>
    %16 = vector.broadcast %4 : i32 to vector<32x1xi32>
    %17 = arith.addi %6, %16 : vector<32x1xi32>
    %18 = arith.select %15, %17, %6 : vector<32x1xi1>, vector<32x1xi32>
    %c0_i32_5 = arith.constant 0 : i32
    %19 = vector.broadcast %c0_i32_5 : i32 to vector<32x1xi32>
    %20 = arith.cmpi eq, %18, %19 : vector<32x1xi32>
    %21 = vector.extract_strided_slice %1 {offsets = [31, 0], sizes = [1, 64], strides = [1, 1]} : vector<32x64xf32> to vector<1x64xf32>
    %22 = vector.extract_strided_slice %1 {offsets = [0, 0], sizes = [31, 64], strides = [1, 1]} : vector<32x64xf32> to vector<31x64xf32>
    %23 = tpu.concatenate %21, %22 in 0 : vector<1x64xf32>, vector<31x64xf32> -> vector<32x64xf32>
    %cst = arith.constant 0.000000e+00 : f32
    %24 = vector.shape_cast %20 : vector<32x1xi1> to vector<32x1xi1>
    %25 = vector.broadcast %24 : vector<32x1xi1> to vector<32x64xi1>
    %26 = vector.broadcast %cst : f32 to vector<32x64xf32>
    %27 = arith.select %25, %26, %23 : vector<32x64xi1>, vector<32x64xf32>
    %c15_i32 = arith.constant 15 : i32
    %28 = vector.broadcast %c15_i32 : i32 to vector<32x1xi32>
    %29 = arith.cmpi eq, %18, %28 : vector<32x1xi32>
    %30 = vector.extract_strided_slice %1 {offsets = [1, 0], sizes = [31, 64], strides = [1, 1]} : vector<32x64xf32> to vector<31x64xf32>
    %31 = vector.extract_strided_slice %1 {offsets = [0, 0], sizes = [1, 64], strides = [1, 1]} : vector<32x64xf32> to vector<1x64xf32>
    %32 = tpu.concatenate %30, %31 in 0 : vector<31x64xf32>, vector<1x64xf32> -> vector<32x64xf32>
    %cst_6 = arith.constant 0.000000e+00 : f32
    %33 = vector.shape_cast %29 : vector<32x1xi1> to vector<32x1xi1>
    %34 = vector.broadcast %33 : vector<32x1xi1> to vector<32x64xi1>
    %35 = vector.broadcast %cst_6 : f32 to vector<32x64xf32>
    %36 = arith.select %34, %35, %32 : vector<32x64xi1>, vector<32x64xf32>
    %37 = arith.truncf %1 : vector<32x64xf32> to vector<32x64xbf16>
    %38 = arith.truncf %27 : vector<32x64xf32> to vector<32x64xbf16>
    %39 = arith.truncf %36 : vector<32x64xf32> to vector<32x64xbf16>
    %c0_7 = arith.constant 0 : index
    %c0_8 = arith.constant 0 : index
    %c0_9 = arith.constant 0 : index
    %40 = vector.load %arg2[%c0_7, %c0_8, %c0_9] : memref<3x64x128xbf16, #tpu.memory_space<vmem>>, vector<1x64x128xbf16>
    %41 = vector.shape_cast %40 : vector<1x64x128xbf16> to vector<64x128xbf16>
    %cst_10 = arith.constant dense<0.000000e+00> : vector<32x128xf32>
    %42 = tpu.matmul %38, %41, %cst_10 {dimension_numbers = #tpu.dot_dimension_numbers<[1], [0], [0], [1], [0, 0, 1, 1], [], []>} : vector<32x64xbf16>, vector<64x128xbf16>, vector<32x128xf32> -> vector<32x128xf32>
    %c1 = arith.constant 1 : index
    %c0_11 = arith.constant 0 : index
    %c0_12 = arith.constant 0 : index
    %43 = vector.load %arg2[%c1, %c0_11, %c0_12] : memref<3x64x128xbf16, #tpu.memory_space<vmem>>, vector<1x64x128xbf16>
    %44 = vector.shape_cast %43 : vector<1x64x128xbf16> to vector<64x128xbf16>
    %cst_13 = arith.constant dense<0.000000e+00> : vector<32x128xf32>
    %45 = tpu.matmul %37, %44, %cst_13 {dimension_numbers = #tpu.dot_dimension_numbers<[1], [0], [0], [1], [0, 0, 1, 1], [], []>} : vector<32x64xbf16>, vector<64x128xbf16>, vector<32x128xf32> -> vector<32x128xf32>
    %46 = arith.addf %42, %45 : vector<32x128xf32>
    %c2 = arith.constant 2 : index
    %c0_14 = arith.constant 0 : index
    %c0_15 = arith.constant 0 : index
    %47 = vector.load %arg2[%c2, %c0_14, %c0_15] : memref<3x64x128xbf16, #tpu.memory_space<vmem>>, vector<1x64x128xbf16>
    %48 = vector.shape_cast %47 : vector<1x64x128xbf16> to vector<64x128xbf16>
    %cst_16 = arith.constant dense<0.000000e+00> : vector<32x128xf32>
    %49 = tpu.matmul %39, %48, %cst_16 {dimension_numbers = #tpu.dot_dimension_numbers<[1], [0], [0], [1], [0, 0, 1, 1], [], []>} : vector<32x64xbf16>, vector<64x128xbf16>, vector<32x128xf32> -> vector<32x128xf32>
    %50 = arith.addf %46, %49 : vector<32x128xf32>
    %c0_17 = arith.constant 0 : index
    %c0_18 = arith.constant 0 : index
    %51 = vector.load %arg3[%c0_17, %c0_18] : memref<1x128xf32, #tpu.memory_space<vmem>>, vector<1x128xf32>
    %52 = vector.broadcast %51 : vector<1x128xf32> to vector<32x128xf32>
    %53 = arith.addf %50, %52 : vector<32x128xf32>
    %54 = vector.shape_cast %53 : vector<32x128xf32> to vector<2x16x128xf32>
    %c0_19 = arith.constant 0 : index
    %c0_20 = arith.constant 0 : index
    %c0_21 = arith.constant 0 : index
    %55 = vector.load %arg4[%c0_19, %c0_20, %c0_21] : memref<2x16x128xf32, #tpu.memory_space<vmem>>, vector<2x16x128xf32>
    tpu.vector_store %arg4[%c0_19, %c0_20, %c0_21], %54 {strides = array<i32>} : memref<2x16x128xf32, #tpu.memory_space<vmem>>, vector<2x16x128xf32>,
    %cst_22 = arith.constant dense<0.000000e+00> : vector<128xf32>
    %56 = vector.multi_reduction <add>, %53, %cst_22 [0] : vector<32x128xf32> to vector<128xf32>
    %57 = vector.shape_cast %56 : vector<128xf32> to vector<1x128xf32>
    %58 = arith.mulf %53, %53 : vector<32x128xf32>
    %cst_23 = arith.constant dense<0.000000e+00> : vector<128xf32>
    %59 = vector.multi_reduction <add>, %58, %cst_23 [0] : vector<32x128xf32> to vector<128xf32>
    %60 = vector.shape_cast %59 : vector<128xf32> to vector<1x128xf32>
    %61 = tpu.concatenate %57, %60 in 0 : vector<1x128xf32>, vector<1x128xf32> -> vector<2x128xf32>
    %c0_24 = arith.constant 0 : index
    %c0_25 = arith.constant 0 : index
    %c0_26 = arith.constant 0 : index
    %62 = vector.load %arg5[%c0_24, %c0_25, %c0_26] : memref<1x2x128xf32, #tpu.memory_space<vmem>>, vector<1x2x128xf32>
    %63 = vector.shape_cast %62 : vector<1x2x128xf32> to vector<2x128xf32>
    %64 = vector.shape_cast %61 : vector<2x128xf32> to vector<1x2x128xf32>
    tpu.vector_store %arg5[%c0_24, %c0_25, %c0_26], %64 {strides = array<i32>} : memref<1x2x128xf32, #tpu.memory_space<vmem>>, vector<1x2x128xf32>,
    return
  }
  func.func @transform_0(%arg0: i32) -> (i32, i32, i32) {
    %c0_i32 = arith.constant 0 : i32
    %c0_i32_0 = arith.constant 0 : i32
    %c0_i32_1 = arith.constant 0 : i32
    return %arg0, %c0_i32, %c0_i32_0 : i32, i32, i32
  }
  func.func @transform_1(%arg0: i32) -> (i32, i32, i32) {
    %c0_i32 = arith.constant 0 : i32
    %c0_i32_0 = arith.constant 0 : i32
    %c0_i32_1 = arith.constant 0 : i32
    %c0_i32_2 = arith.constant 0 : i32
    return %c0_i32, %c0_i32_0, %c0_i32_1 : i32, i32, i32
  }
  func.func @transform_2(%arg0: i32) -> (i32, i32) {
    %c0_i32 = arith.constant 0 : i32
    %c0_i32_0 = arith.constant 0 : i32
    %c0_i32_1 = arith.constant 0 : i32
    return %c0_i32, %c0_i32_0 : i32, i32
  }
  func.func @transform_3(%arg0: i32) -> (i32, i32, i32) {
    %c0_i32 = arith.constant 0 : i32
    %c0_i32_0 = arith.constant 0 : i32
    %c0_i32_1 = arith.constant 0 : i32
    return %arg0, %c0_i32, %c0_i32_0 : i32, i32, i32
  }
  func.func @transform_4(%arg0: i32) -> (i32, i32, i32) {
    %c0_i32 = arith.constant 0 : i32
    %c0_i32_0 = arith.constant 0 : i32
    %c0_i32_1 = arith.constant 0 : i32
    return %arg0, %c0_i32, %c0_i32_0 : i32, i32, i32
  }
}

</mosaic_0001>

<bundles_post_ra>
// kernel: tpu_custom_call.1
= control target key start
LH: loop header
LB: loop body
LE: loop exit
PB: predicated region body
PF: predicated region fallthrough
CT: control target
= control target key end

     0   :  { %10 = vsyncpa [#allocation3], 0  ;;  %s692_s0 = inlined_call_operand.hbm [shape: f32[2,16,64], index: 0, kind: input, shape index: {}]   ;;  %s693_s1 = inlined_call_operand.hbm [shape: bf16[3,64,128], index: 1, kind: input, shape index: {}]   ;;  %s694_s2 = inlined_call_operand.vmem [shape: f32[1,128], index: 2, kind: input, shape index: {}]   ;;  %s695_s3 = inlined_call_operand.hbm [shape: f32[2,16,128], index: 3, kind: output, shape index: {0}]   ;;  %s696_s4 = inlined_call_operand.hbm [shape: f32[1,2,128], index: 4, kind: output, shape index: {1}]  }
   0x1   :  { %11 = vsyncpa [#allocation6], 0 }
   0x2   :  { %12 = vsyncpa [#allocation4], 0 }
   0x3   :  { %13 = vsyncpa [#allocation9], 0  ;;  %s18_s17 = sshll.u32 %s692_s0, 4  ;;  %s611_s18 = smov [#allocation2]   ;;  %s19_s17 = int_to_ptr.hbm [resolvable:$true] %s18_s17 }
   0x4   :  { %s20_s19 = sshll.u32 %s611_s18, 4  ;;  %s31_s22 = sshll.u32 %s693_s1, 4  ;;  %s21_s19 = int_to_ptr.vmem [resolvable:$true] %s20_s19  ;;  %s32_s22 = int_to_ptr.hbm [resolvable:$true] %s31_s22 }
   0x5   :  { %s612_s23 = smov 128   ;;  %s613_s24 = smov 8  }
   0x6   :  { %26 = dma.hbm_to_vmem [thread:$0]  %s19_s17, 512, %s21_s19, [#allocation3], %s612_s23, %s612_s23, %s613_s24  }
   0x7   :  { %s614_s25 = smov [#allocation5]   ;;  %s615_s27 = smov 64  }
   0x8   :  { %s33_s26 = sshll.u32 %s614_s25, 4  ;;  %s616_s0 = smov 4   ;;  %s34_s26 = int_to_ptr.vmem [resolvable:$true] %s33_s26 }
   0x9   :  { %39 = dma.hbm_to_vmem [thread:$0]  %s32_s22, 1536, %s34_s26, [#allocation6], %s615_s27, %s615_s27, %s616_s0  }
   0xa   :  { %603 = dma.done.wait [#allocation3], 512  }
   0xb   :  { %604 = vsyncadd [#allocation3], 4294966784 }
   0xc   :  { %605 = dma.done.wait [#allocation6], 1536  }
   0xd   :  { %606 = vsyncadd [#allocation6], 4294965760  ;;  %v55_v0 = vlaneseq  ;;  %v489_v2 = vld [vmem:[#allocation5 + $0x38] sm:$0xff]  ;;  %v488_v6 = vld [vmem:[#allocation5 + $0x30] sm:$0xff]  ;;  %vm118_vm0 = vcmask 1040384   ;;  %vm146_vm1 = vcmask 1046528  }
   0xe   :  { %v485_v3 = vld [vmem:[#allocation5 + $0x18] sm:$0xff]  ;;  %230 = vmatpush.bf16.msra.mxu0 %v489_v2  ;;  %v484_v7 = vld [vmem:[#allocation5 + $0x10] sm:$0xff]  ;;  %494 = vmatpush.bf16.msra.mxu3 %v489_v2  ;;  %v51_v10 = vld [vmem:[#allocation2] sm:$0xff]  ;;  %vm219_vm4 = vcmask 523264   ;;  %s398_s6 = sshll.u32 %s695_s3, 4  ;;  %s618_s3 = smov [#allocation8]   ;;  %s399_s6 = int_to_ptr.hbm [resolvable:$true] %s398_s6 }
   0xf   :  { %v56_v1 = vshrl.u32 %v55_v0, 7  ;;  %v493_v4 = vld [vmem:[#allocation5 + $0x58] sm:$0xff]  ;;  %279 = vmatpush.bf16.msra.mxu1 %v485_v3  ;;  %v492_v8 = vld [vmem:[#allocation5 + $0x50] sm:$0xff]  ;;  %v52_v11 = vld [vmem:[#allocation2 + $0x8] sm:$0xff]  ;;  %v119_v15 = vrot.slane %v51_v10, 7  ;;  %v147_v23 = vrot.slane %v51_v10, 1 }
  0x10   :  { %337 = vmatpush.bf16.msra.mxu2 %v493_v4  ;;  %v54_v12 = vld [vmem:[#allocation2 + $0x18] sm:$0xff]  ;;  %v487_v14 = vld [vmem:[#allocation5 + $0x28] sm:$0xff]  ;;  %v148_v16 = vrot.slane %v52_v11, 1  ;;  %v53_v17 = vld [vmem:[#allocation2 + $0x10] sm:$0xff]  ;;  %v120_v19 = vrot.slane %v52_v11, 7  ;;  %v172_v35 = vpack.c.bf16 %v52_v11, %v51_v10  ;;  %s410_s7 = sshll.u32 %s618_s3, 4  ;;  %s411_s7 = int_to_ptr.vmem [resolvable:$true] %s410_s7 }
  0x11   :  { %v57_v5 = vadd.s32 8, %v56_v1  ;;  %v64_v9 = vand.u32 15, %v56_v1  ;;  %v483_v18 = vld [vmem:[#allocation5 + $0x8] sm:$0xff]  ;;  %v113_v20 = vrot.slane %v54_v12, 7  ;;  %v150_v21 = vrot.slane %v53_v17, 1  ;;  %v486_v28 = vld [vmem:[#allocation5 + $0x20] sm:$0xff] }
  0x12   :  { %231 = vmatpush.bf16.msra.mxu0 %v488_v6  ;;  %v491_v22 = vld [vmem:[#allocation5 + $0x48] sm:$0xff]  ;;  %495 = vmatpush.bf16.msra.mxu3 %v488_v6  ;;  %v482_v29 = vld [vmem:[#allocation5] sm:$0xff]  ;;  %v121_v30 = vsel %vm118_vm0, %v119_v15, %v120_v19  ;;  %v149_v33 = vsel %vm146_vm1, %v147_v23, %v148_v16  ;;  %v173_v38 = vpack.c.bf16 %v54_v12, %v53_v17  ;;  %v58_v39 = vadd.s32 16, %v56_v1  ;;  %s412_s10 = sshll.u32 %s696_s4, 4  ;;  %s413_s10 = int_to_ptr.hbm [resolvable:$true] %s412_s10 }
  0x13   :  { %v71_v13 = vand.u32 15, %v57_v5  ;;  %280 = vmatpush.bf16.msra.mxu1 %v484_v7  ;;  %vm653_vm2 = vcmp.eq.s32.totalorder %v64_v9, 0  ;;  %v129_v25 = vsel %vm118_vm0, %v113_v20, %v119_v15  ;;  %v151_v27 = vsel %vm146_vm1, %v148_v16, %v150_v21  ;;  %v490_v32 = vld [vmem:[#allocation5 + $0x40] sm:$0xff] }
  0x14   :  { %338 = vmatpush.bf16.msra.mxu2 %v492_v8  ;;  %v138_v31 = vsel %vm653_vm2, 0.0, %v129_v25  ;;  %v59_v40 = vadd.s32 24, %v56_v1  ;;  %v78_v41 = vand.u32 15, %v58_v39  ;;  %v122_v42 = vrot.slane %v53_v17, 7  ;;  %v506_v56 = vld [vmem:[%s694_s2] ss:$0 sm:$0xff] }
  0x15   :  { %vm658_vm3 = vcmp.eq.s32.totalorder %v71_v13, 15  ;;  %v174_v36 = vpack.c.bf16 %v121_v30, %v138_v31  ;;  %v152_v44 = vrot.slane %v54_v12, 1  ;;  %s617_s2 = smov [#allocation7]  }
  0x16   :  { %232 = vmatpush.bf16.msra.mxu0 %v487_v14  ;;  %496 = vmatpush.bf16.msra.mxu3 %v487_v14  ;;  %v169_v34 = vsel %vm658_vm3, 0.0, %v151_v27  ;;  %v85_v43 = vand.u32 15, %v59_v40  ;;  %vm110_vm5 = vcmp.eq.s32.totalorder %v78_v41, 0  ;;  %v123_v45 = vsel %vm118_vm0, %v120_v19, %v122_v42  ;;  %s396_s29 = sshll.u32 %s617_s2, 4  ;;  %s397_s29 = int_to_ptr.vmem [resolvable:$true] %s396_s29 }
  0x17   :  { %281 = vmatpush.bf16.msra.mxu1 %v483_v18  ;;  %v176_v37 = vpack.c.bf16 %v169_v34, %v149_v33  ;;  %v159_v46 = vsel %vm146_vm1, %v152_v44, %v147_v23  ;;  %v124_v47 = vsel %vm118_vm0, %v122_v42, %v113_v20  ;;  %v140_v48 = vsel %vm110_vm5, 0.0, %v123_v45 }
  0x18   :  { %339 = vmatpush.bf16.msra.mxu2 %v491_v22  ;;  %vm145_vm6 = vcmp.eq.s32.totalorder %v85_v43, 15  ;;  %v153_v49 = vsel %vm146_vm1, %v150_v21, %v152_v44  ;;  %v175_v51 = vpack.c.bf16 %v124_v47, %v140_v48 }
  0x19   :  { %v171_v50 = vsel %vm145_vm6, 0.0, %v159_v46 }
  0x1a   :  { %233 = vmatpush.bf16.msra.mxu0 %v486_v28  ;;  %497 = vmatpush.bf16.msra.mxu3 %v486_v28  ;;  %v177_v52 = vpack.c.bf16 %v171_v50, %v153_v49 }
  0x1b   :  { %282 = vmatpush.bf16.msra.mxu1 %v482_v29 }
  0x1c   :  { %340 = vmatpush.bf16.msra.mxu2 %v490_v32 }
  0x1d   :  { %444 = vmatmul.msk.bf16.vlgmr.msra.gmra.mxu0 %vm219_vm4, %v172_v35  ;;  %445 = vmatmul.msk.bf16.vlgmr.msra.gmra.mxu3 %vm219_vm4, %v173_v38 }
  0x1e   :  { %462 = vmatmul.msk.bf16.vlgmr.msra.gmra.mxu1 %vm219_vm4, %v174_v36 }
  0x1f   :  { %480 = vmatmul.msk.bf16.vlgmr.msra.gmra.mxu2 %vm219_vm4, %v176_v37 }
  0x2e   :  { %463 = vmatmul.msk.bf16.gmra.mxu1 %vm219_vm4, %v175_v51 }
  0x2f   :  { %481 = vmatmul.msk.bf16.gmra.mxu2 %vm219_vm4, %v177_v52 }
  0x9a   :  { %v235_v54 = vpop.f32.mrf.mxu0 }
  0x9b   :  { %v284_v53 = vpop.f32.mrf.mxu1 }
  0x9c   :  { %v285_v55 = vadd.f32 %v284_v53, %v235_v54 }
  0xa0   :  { %v240_v3 = vpop.f32.mrf.mxu3 }
  0xa2   :  { %v342_v57 = vpop.f32.mrf.mxu2  ;;  %v237_v61 = vpop.f32.mrf.mxu0 }
  0xa3   :  { %v352_v58 = vadd.f32 %v342_v57, %v285_v55  ;;  %v286_v59 = vpop.f32.mrf.mxu1 }
  0xa4   :  { %v287_v62 = vadd.f32 %v286_v59, %v237_v61 }
  0xa5   :  { %v360_v60 = vadd.f32 %v506_v56, %v352_v58 }
  0xa7   :  { %364 = vst [vmem:[#allocation7] sm:$0xff] %v360_v60  ;;  %v377_v13 = vmul.f32 %v360_v60, %v360_v60 }
  0xa8   :  { %v242_v9 = vpop.f32.mrf.mxu3 }
  0xaa   :  { %v344_v63 = vpop.f32.mrf.mxu2 }
  0xab   :  { %v353_v0 = vadd.f32 %v344_v63, %v287_v62  ;;  %v289_v1 = vpop.f32.mrf.mxu1 }
  0xac   :  { %v290_v4 = vadd.f32 %v289_v1, %v240_v3 }
  0xad   :  { %v361_v2 = vadd.f32 %v506_v56, %v353_v0 }
  0xaf   :  { %365 = vst [vmem:[#allocation7 + $0x8] sm:$0xff] %v361_v2  ;;  %v378_v10 = vmul.f32 %v361_v2, %v361_v2  ;;  %v368_v14 = vadd.f32 %v361_v2, %v360_v60 }
  0xb1   :  { %v381_v17 = vadd.f32 %v378_v10, %v377_v13 }
  0xb2   :  { %v347_v5 = vpop.f32.mrf.mxu2 }
  0xb3   :  { %v354_v6 = vadd.f32 %v347_v5, %v290_v4  ;;  %v291_v8 = vpop.f32.mrf.mxu1 }
  0xb4   :  { %v292_v11 = vadd.f32 %v291_v8, %v242_v9 }
  0xb5   :  { %v362_v7 = vadd.f32 %v506_v56, %v354_v6 }
  0xb7   :  { %366 = vst [vmem:[#allocation7 + $0x10] sm:$0xff] %v362_v7  ;;  %v379_v15 = vmul.f32 %v362_v7, %v362_v7  ;;  %v369_v18 = vadd.f32 %v368_v14, %v362_v7 }
  0xb9   :  { %v382_v20 = vadd.f32 %v381_v17, %v379_v15 }
  0xba   :  { %v349_v12 = vpop.f32.mrf.mxu2 }
  0xbb   :  { %v355_v16 = vadd.f32 %v349_v12, %v292_v11 }
  0xbd   :  { %v363_v19 = vadd.f32 %v506_v56, %v355_v16 }
  0xbf   :  { %367 = vst [vmem:[#allocation7 + $0x18] sm:$0xff] %v363_v19  ;;  %v370_v21 = vadd.f32 %v369_v18, %v363_v19  ;;  %v380_v22 = vmul.f32 %v363_v19, %v363_v19 }
  0xc0   :  { %404 = dma.vmem_to_hbm [thread:$0]  %s397_s29, 512, %s399_s6, [#allocation4], %s612_s23, %s612_s23, %s613_s24  }
  0xc1   :  { %v371_v23 = vrot.slane %v370_v21, 4  ;;  %v383_v24 = vadd.f32 %v382_v20, %v380_v22 }
  0xc3   :  { %v372_v25 = vadd.f32 %v371_v23, %v370_v21  ;;  %v384_v26 = vrot.slane %v383_v24, 4 }
  0xc5   :  { %v373_v27 = vrot.slane %v372_v25, 2  ;;  %v385_v28 = vadd.f32 %v384_v26, %v383_v24 }
  0xc7   :  { %v374_v29 = vadd.f32 %v373_v27, %v372_v25  ;;  %v386_v30 = vrot.slane %v385_v28, 2 }
  0xc9   :  { %v375_v31 = vrot.slane %v374_v29, 1  ;;  %v387_v32 = vadd.f32 %v386_v30, %v385_v28 }
  0xcb   :  { %v388_v33 = vrot.slane %v387_v32, 1  ;;  %v376_v34 = vadd.f32 %v375_v31, %v374_v29 }
  0xcd   :  { %v389_v35 = vadd.f32 %v388_v33, %v387_v32 }
  0xcf   :  { %v390_v36 = vsel %vm118_vm0, %v376_v34, %v389_v35 }
  0xd0   :  { %391 = vst [vmem:[#allocation8] sm:$0x3] %v390_v36 }
  0xd1   :  { %415 = dma.vmem_to_hbm [thread:$0]  %s411_s7, 32, %s413_s10, [#allocation9]  }
  0xd2   :  { %607 = dma.done.wait [#allocation4], 512  }
  0xd3   :  { %608 = vsyncadd [#allocation4], 4294966784 }
  0xd4   :  { %609 = dma.done.wait [#allocation9], 32  }
  0xd5   :  { %610 = vsyncadd [#allocation9], 4294967264 }
  0xd6   :  { %424 = vsyncpa [#allocation3], 1 }
  0xd7   :  { %425 = vsyncpa [#allocation6], 1 }
  0xd8   :  { %426 = vsyncpa [#allocation4], 1 }
  0xd9   :  { %427 = vsyncpa [#allocation9], 1 }

</bundles_post_ra>
